<compile_context>
chip_gen: v7x
topology: tpu7x:2x2x1
jax: 0.10.0
libtpu: 0.0.40
codegen_flags: <defaults>
</compile_context>

<pallas_src>
import jax
import jax.numpy as jnp
import numpy as np
from jax.experimental import pallas as pl
from jax.experimental.pallas import tpu as pltpu


def _attn_pool_kernel(x_ref, w1_ref, b1_ref, w2r_ref, o_ref):
    TB, N, D = x_ref.shape
    H = w1_ref.shape[1]

    # ---- scores: tanh(x @ W1 + b1) . w2 -------------------------------------
    # MXU matmul; inputs optionally bf16 (w1_ref.dtype), f32 accumulation.
    xm = x_ref[...].reshape(TB * N, D).astype(w1_ref.dtype)
    h = jnp.tanh(
        jnp.dot(xm, w1_ref[...], preferred_element_type=jnp.float32)
        + b1_ref[...]                                   # (1, H) broadcast
    )                                                   # (TB*N, H) f32
    h = h.reshape(TB, N, H)
    # Per-row score as a lane-axis reduce against the w2 row; keeping scores as
    # a sublane column means the softmax weights broadcast across the D lanes
    # below without any lane->sublane shuffle.  b2 omitted: softmax over the
    # sequence is shift-invariant, so it cannot change the output.
    s = jnp.sum(h * w2r_ref[...].reshape(1, 1, H), axis=-1, keepdims=True)  # (TB, N, 1)

    # ---- softmax over the sequence axis (sublanes within each batch group) --
    m = jnp.max(s, axis=1, keepdims=True)               # (TB, 1, 1)
    e = jnp.exp(s - m)                                  # (TB, N, 1)
    w = e / jnp.sum(e, axis=1, keepdims=True)           # (TB, N, 1), exact divide

    # ---- weighted pooling on the VPU: broadcast over D lanes, reduce over N --
    # Re-read x from the VMEM ref (f32) instead of keeping the earlier load
    # live across tanh/softmax; VMEM reloads are nearly free, spills are not.
    pooled = jnp.sum(x_ref[...] * w, axis=1)            # (TB, D) f32
    o_ref[...] = pooled.astype(o_ref.dtype)


def _vmem_capacity_bytes():
    """Physical VMEM per TensorCore (128 MiB v5e/v6e, 64 MiB v7x)."""
    try:
        cap = getattr(pltpu.get_tpu_info(), "vmem_capacity_bytes", None)
        if cap:
            return int(cap)
    except Exception:
        pass
    return 64 * 1024 * 1024  # conservative fallback (v7x per-core figure)


def _choose_batch_tile(B, N, D, H, vmem_limit_bytes, matmul_itemsize):
    """Largest batch tile whose *total* resident VMEM fits the budget."""
    per_tb = (
        2 * N * D * 4              # x block, double-buffered, f32
        + N * D * matmul_itemsize  # x cast to the score-matmul dtype
        + N * H * 4                # hidden activations h
        + N * D * 4                # x * weights pooling temporary
        + 2 * D * 4                # output block, double-buffered
        + N * 64                   # scores / softmax temporaries
    )
    fixed = (
        2 * D * H * matmul_itemsize  # W1, double-buffered
        + 4 * H * 4                  # b1 + w2 row, double-buffered
        + (2 << 20)                  # compiler-internal scratch margin
    )
    budget = int(vmem_limit_bytes * 0.7)
    tb = max(1, (budget - fixed) // per_tb)
    tb = int(min(tb, B, 1024))
    # Keep the grid length >= 2 when the batch allows it so the "parallel" axis
    # can be sharded across both TensorCores on megacore generations.
    if B >= 16 and pl.cdiv(B, tb) < 2:
        tb = ((B + 1) // 2 + 7) // 8 * 8
    if tb >= B:
        return B
    if tb >= 8:
        return (tb // 8) * 8
    # TODO(synk): tb < 8 here means N*D is huge; add the sequence-axis grid
    # (online softmax) instead of relying on sub-8 partial output blocks.
    return min(8, B)


def attention_pool(x, w1, b1, w2, b2=None, *, score_matmul_dtype=jnp.bfloat16):
    """AttentionPool forward.

    x: (B, N, D) float32.  w1: (D, H)  b1: (1, H)  w2: (H, 1)  b2: (1, 1).
    Returns (B, D).

    b2 is accepted for API parity but unused: softmax over the sequence axis is
    shift-invariant, so the second Linear's bias cannot change the output.
    score_matmul_dtype only affects the x@W1 matmul inputs (pre-softmax
    scores); softmax and pooling are always f32.
    """
    del b2
    B, N, D = x.shape
    H = w1.shape[1]
    assert w1.shape == (D, H) and w2.shape == (H, 1)
    b1 = jnp.asarray(b1, jnp.float32).reshape(1, H)
    w1m = jnp.asarray(w1).astype(score_matmul_dtype)      # tiny; x is NOT copied
    w2r = jnp.asarray(w2, jnp.float32).reshape(1, H)      # row for a lane reduce

    vmem_cap = _vmem_capacity_bytes()
    vmem_limit = min(vmem_cap * 3 // 4, 100 * 1024 * 1024)
    itemsize = jnp.dtype(score_matmul_dtype).itemsize
    TB = _choose_batch_tile(B, N, D, H, vmem_limit, itemsize)
    grid = (pl.cdiv(B, TB),)

    return pl.pallas_call(
        _attn_pool_kernel,
        out_shape=jax.ShapeDtypeStruct((B, D), x.dtype),
        grid_spec=pltpu.PrefetchScalarGridSpec(
            num_scalar_prefetch=0,
            grid=grid,
            in_specs=[
                pl.BlockSpec((TB, N, D), lambda b: (b, 0, 0)),  # x slab
                pl.BlockSpec((D, H), lambda b: (0, 0)),         # W1 (invariant)
                pl.BlockSpec((1, H), lambda b: (0, 0)),         # b1
                pl.BlockSpec((1, H), lambda b: (0, 0)),         # w2 as a row
            ],
            out_specs=pl.BlockSpec((TB, D), lambda b: (b, 0)),
        ),
        compiler_params=pltpu.CompilerParams(
            dimension_semantics=("parallel",),
            vmem_limit_bytes=int(vmem_limit),
        ),
    )(x, w1m, b1, w2r)


def _attention_pool_ref(x, w1, b1, w2, b2):
    """float64 NumPy ground truth of the PyTorch module."""
    x = np.asarray(x, np.float64)
    w1 = np.asarray(w1, np.float64)
    b1 = np.asarray(b1, np.float64)
    w2 = np.asarray(w2, np.float64)
    b2 = np.asarray(b2, np.float64)
    h = np.tanh(x @ w1 + b1)                    # (B, N, H)
    s = h @ w2 + b2                             # (B, N, 1)
    s = s - s.max(axis=1, keepdims=True)
    p = np.exp(s)
    p = p / p.sum(axis=1, keepdims=True)
    return (x * p).sum(axis=1)                  # (B, D)


if __name__ == "__main__":
    B, N, D, H = 2, 8, 32, 128

    key = jax.random.PRNGKey(0)
    kx, k1, k2, k3, k4 = jax.random.split(key, 5)

    # Deterministic nn.Linear-style init (uniform +-1/sqrt(fan_in)).
    x = jax.random.normal(kx, (B, N, D), dtype=jnp.float32)
    lim1 = 1.0 / (D ** 0.5)
    w1 = jax.random.uniform(k1, (D, H), jnp.float32, -lim1, lim1)
    b1 = jax.random.uniform(k2, (1, H), jnp.float32, -lim1, lim1)
    lim2 = 1.0 / (H ** 0.5)
    w2 = jax.random.uniform(k3, (H, 1), jnp.float32, -lim2, lim2)
    b2 = jax.random.uniform(k4, (1, 1), jnp.float32, -lim2, lim2)

    ref = _attention_pool_ref(x, w1, b1, w2, b2)

    # f32 score-matmul path: tolerance covers MXU f32 pass decomposition.
    out_f32 = jax.block_until_ready(
        attention_pool(x, w1, b1, w2, b2, score_matmul_dtype=jnp.float32))
    assert out_f32.shape == (B, D)
    err_f32 = float(np.max(np.abs(np.asarray(out_f32, np.float64) - ref)))
    assert err_f32 < 1e-2, f"f32-score path max abs err {err_f32}"

    # Default bf16 score-matmul path (v5e throughput option): the pre-softmax
    # scores are bf16-quantized, so the tolerance is intentionally wider.
    out_bf16 = jax.block_until_ready(attention_pool(x, w1, b1, w2, b2))
    assert out_bf16.shape == (B, D)
    err_bf16 = float(np.max(np.abs(np.asarray(out_bf16, np.float64) - ref)))
    assert err_bf16 < 5e-2, f"bf16-score path max abs err {err_bf16}"

    print("KERNEL_OK")
</pallas_src>

<mosaic_0001>
module attributes {stable_mosaic.version = 11 : i64} {
  func.func @_attn_pool_kernel(%arg0: i32, %arg1: memref<2x8x32xf32, #tpu.memory_space<vmem>>, %arg2: memref<32x128xf32, #tpu.memory_space<vmem>>, %arg3: memref<1x128xf32, #tpu.memory_space<vmem>>, %arg4: memref<1x128xf32, #tpu.memory_space<vmem>>, %arg5: memref<2x32xf32, #tpu.memory_space<vmem>>) attributes {dimension_semantics = [#tpu.dimension_semantics<parallel>], iteration_bounds = array<i64: 1>, scalar_prefetch = 0 : i64, scratch_operands = 0 : i64, tpu.core_type = #tpu.core_type<tc>, window_params = [{transform_indices = @transform_0, window_bounds = array<i64: 2, 8, 32>}, {pipeline_mode = #tpu.pipeline_mode<synchronous>, transform_indices = @transform_1, window_bounds = array<i64: 32, 128>}, {pipeline_mode = #tpu.pipeline_mode<synchronous>, transform_indices = @transform_2, window_bounds = array<i64: 1, 128>}, {pipeline_mode = #tpu.pipeline_mode<synchronous>, transform_indices = @transform_3, window_bounds = array<i64: 1, 128>}, {transform_indices = @transform_4, window_bounds = array<i64: 2, 32>}]} {
    %c0 = arith.constant 0 : index
    %c0_0 = arith.constant 0 : index
    %c0_1 = arith.constant 0 : index
    %0 = vector.load %arg1[%c0, %c0_0, %c0_1] : memref<2x8x32xf32, #tpu.memory_space<vmem>>, vector<2x8x32xf32>
    %1 = vector.shape_cast %0 : vector<2x8x32xf32> to vector<16x32xf32>
    %c0_2 = arith.constant 0 : index
    %c0_3 = arith.constant 0 : index
    %2 = vector.load %arg2[%c0_2, %c0_3] : memref<32x128xf32, #tpu.memory_space<vmem>>, vector<32x128xf32>
    %cst = arith.constant dense<0.000000e+00> : vector<16x128xf32>
    %3 = tpu.matmul %1, %2, %cst {dimension_numbers = #tpu.dot_dimension_numbers<[1], [0], [0], [1], [0, 0, 1, 1], [], []>} : vector<16x32xf32>, vector<32x128xf32>, vector<16x128xf32> -> vector<16x128xf32>
    %c0_4 = arith.constant 0 : index
    %c0_5 = arith.constant 0 : index
    %4 = vector.load %arg3[%c0_4, %c0_5] : memref<1x128xf32, #tpu.memory_space<vmem>>, vector<1x128xf32>
    %5 = vector.broadcast %4 : vector<1x128xf32> to vector<16x128xf32>
    %6 = arith.addf %3, %5 : vector<16x128xf32>
    %7 = math.tanh %6 : vector<16x128xf32>
    %8 = vector.shape_cast %7 : vector<16x128xf32> to vector<2x8x128xf32>
    %c0_6 = arith.constant 0 : index
    %c0_7 = arith.constant 0 : index
    %9 = vector.load %arg4[%c0_6, %c0_7] : memref<1x128xf32, #tpu.memory_space<vmem>>, vector<1x128xf32>
    %10 = vector.shape_cast %9 : vector<1x128xf32> to vector<1x1x128xf32>
    %11 = vector.broadcast %10 : vector<1x1x128xf32> to vector<2x8x128xf32>
    %12 = arith.mulf %8, %11 : vector<2x8x128xf32>
    %cst_8 = arith.constant dense<0.000000e+00> : vector<2x8xf32>
    %13 = vector.multi_reduction <add>, %12, %cst_8 [2] : vector<2x8x128xf32> to vector<2x8xf32>
    %14 = vector.shape_cast %13 : vector<2x8xf32> to vector<2x8x1xf32>
    %cst_9 = arith.constant dense<0xFF800000> : vector<2x1xf32>
    %15 = vector.multi_reduction <maximumf>, %14, %cst_9 [1] : vector<2x8x1xf32> to vector<2x1xf32>
    %16 = vector.shape_cast %15 : vector<2x1xf32> to vector<2x1x1xf32>
    %17 = vector.broadcast %16 : vector<2x1x1xf32> to vector<2x8x1xf32>
    %18 = arith.subf %14, %17 : vector<2x8x1xf32>
    %19 = math.exp %18 : vector<2x8x1xf32>
    %cst_10 = arith.constant dense<0.000000e+00> : vector<2x1xf32>
    %20 = vector.multi_reduction <add>, %19, %cst_10 [1] : vector<2x8x1xf32> to vector<2x1xf32>
    %21 = vector.shape_cast %20 : vector<2x1xf32> to vector<2x1x1xf32>
    %22 = vector.broadcast %21 : vector<2x1x1xf32> to vector<2x8x1xf32>
    %23 = arith.divf %19, %22 : vector<2x8x1xf32>
    %c0_11 = arith.constant 0 : index
    %c0_12 = arith.constant 0 : index
    %c0_13 = arith.constant 0 : index
    %24 = vector.load %arg1[%c0_11, %c0_12, %c0_13] : memref<2x8x32xf32, #tpu.memory_space<vmem>>, vector<2x8x32xf32>
    %25 = vector.broadcast %23 : vector<2x8x1xf32> to vector<2x8x32xf32>
    %26 = arith.mulf %24, %25 : vector<2x8x32xf32>
    %cst_14 = arith.constant dense<0.000000e+00> : vector<2x32xf32>
    %27 = vector.multi_reduction <add>, %26, %cst_14 [1] : vector<2x8x32xf32> to vector<2x32xf32>
    %c0_15 = arith.constant 0 : index
    %c0_16 = arith.constant 0 : index
    %28 = vector.load %arg5[%c0_15, %c0_16] : memref<2x32xf32, #tpu.memory_space<vmem>>, vector<2x32xf32>
    tpu.vector_store %arg5[%c0_15, %c0_16], %27 {strides = array<i32>} : memref<2x32xf32, #tpu.memory_space<vmem>>, vector<2x32xf32>,
    return
  }
  func.func @transform_0(%arg0: i32) -> (i32, i32, i32) {
    %c0_i32 = arith.constant 0 : i32
    %c0_i32_0 = arith.constant 0 : i32
    %c0_i32_1 = arith.constant 0 : i32
    return %arg0, %c0_i32, %c0_i32_0 : i32, i32, i32
  }
  func.func @transform_1(%arg0: i32) -> (i32, i32) {
    %c0_i32 = arith.constant 0 : i32
    %c0_i32_0 = arith.constant 0 : i32
    %c0_i32_1 = arith.constant 0 : i32
    return %c0_i32, %c0_i32_0 : i32, i32
  }
  func.func @transform_2(%arg0: i32) -> (i32, i32) {
    %c0_i32 = arith.constant 0 : i32
    %c0_i32_0 = arith.constant 0 : i32
    %c0_i32_1 = arith.constant 0 : i32
    return %c0_i32, %c0_i32_0 : i32, i32
  }
  func.func @transform_3(%arg0: i32) -> (i32, i32) {
    %c0_i32 = arith.constant 0 : i32
    %c0_i32_0 = arith.constant 0 : i32
    %c0_i32_1 = arith.constant 0 : i32
    return %c0_i32, %c0_i32_0 : i32, i32
  }
  func.func @transform_4(%arg0: i32) -> (i32, i32) {
    %c0_i32 = arith.constant 0 : i32
    %c0_i32_0 = arith.constant 0 : i32
    return %arg0, %c0_i32 : i32, i32
  }
}

</mosaic_0001>

<bundles_post_ra>
// kernel: tpu_custom_call.1
= control target key start
LH: loop header
LB: loop body
LE: loop exit
PB: predicated region body
PF: predicated region fallthrough
CT: control target
= control target key end

     0   :  { %9 = vsyncpa [#allocation3], 0  ;;  %s423_s0 = inlined_call_operand.hbm [shape: f32[2,8,32], index: 0, kind: input, shape index: {}]   ;;  %s424_s1 = inlined_call_operand.hbm [shape: f32[32,128], index: 1, kind: input, shape index: {}]   ;;  %s425_s2 = inlined_call_operand.vmem [shape: f32[1,128], index: 2, kind: input, shape index: {}]   ;;  %s426_s3 = inlined_call_operand.vmem [shape: f32[1,128], index: 3, kind: input, shape index: {}]   ;;  %s427_s4 = inlined_call_operand.hbm [shape: f32[2,32], index: 4, kind: output, shape index: {}]  }
   0x1   :  { %10 = vsyncpa [#allocation6], 0 }
   0x2   :  { %11 = vsyncpa [#allocation4], 0  ;;  %s347_s15 = smov [#allocation2]   ;;  %s275_s19 = scalar_lea.hbm %s423_s0, 256 }
   0x3   :  { %s17_s16 = sshll.u32 %s347_s15, 4  ;;  %p276_p0 = scmp.ne.s32.totalorder %s423_s0, %s275_s19  ;;  %s18_s16 = int_to_ptr.vmem [resolvable:$true] %s17_s16 }
   0x4   :  { %p279_p1 = scmp.lt.u32.totalorder %s275_s19, %s423_s0 }
   0x6   :  { %p281_p2 = pnand %p279_p1, %p276_p0 }
   0x8   :  { %284 = shalt.err (!%p281_p2)
}
   0x9   :  { %s285_s24 = scalar_lea.vmem %s18_s16, 256  ;;  %p290_p4 = scmp.lt.s32.totalorder %s18_s16, %s18_s16 }
   0xa   :  { %p286_p3 = scmp.ne.s32.totalorder %s18_s16, %s285_s24  ;;  %p291_p5 = scmp.lt.s32.totalorder %s285_s24, %s285_s24 }
   0xc   :  { %p292_p6 = por %p291_p5, %p290_p4 }
   0xe   :  { %p293_p7 = pnand %p292_p6, %p286_p3 }
  0x10   :  { %296 = shalt.err (!%p293_p7)
}
  0x11   :  { %s348_s25 = smov 128   ;;  %s349_s26 = smov 8  }
  0x12   :  { %23 = dma.hbm_to_vmem [thread:$0]  %s423_s0, 256, %s18_s16, [#allocation3], %s348_s25, %s348_s25, %s349_s26  }
  0x13   :  { %s350_s29 = smov [#allocation5]   ;;  %s297_s7 = scalar_lea.hbm %s424_s1, 512 }
  0x14   :  { %s29_s30 = sshll.u32 %s350_s29, 4  ;;  %p298_p8 = scmp.ne.s32.totalorder %s424_s1, %s297_s7  ;;  %s30_s30 = int_to_ptr.vmem [resolvable:$true] %s29_s30 }
  0x15   :  { %p301_p9 = scmp.lt.u32.totalorder %s297_s7, %s424_s1 }
  0x17   :  { %p303_p10 = pnand %p301_p9, %p298_p8 }
  0x19   :  { %306 = shalt.err (!%p303_p10)
}
  0x1a   :  { %s307_s12 = scalar_lea.vmem %s30_s30, 512  ;;  %p312_p12 = scmp.lt.s32.totalorder %s30_s30, %s30_s30 }
  0x1b   :  { %p308_p11 = scmp.ne.s32.totalorder %s30_s30, %s307_s12  ;;  %p313_p13 = scmp.lt.s32.totalorder %s307_s12, %s307_s12 }
  0x1d   :  { %p314_p0 = por %p313_p13, %p312_p12 }
  0x1f   :  { %p315_p1 = pnand %p314_p0, %p308_p11 }
  0x21   :  { %318 = shalt.err (!%p315_p1)
}
  0x22   :  { %35 = dma.hbm_to_vmem [thread:$0]  %s424_s1, 512, %s30_s30, [#allocation6], %s348_s25, %s348_s25, %s349_s26  }
  0x23   :  { %341 = dma.done.wait [#allocation3], 256  }
  0x24   :  { %342 = vsyncadd [#allocation3], 4294967040 }
  0x25   :  { %343 = dma.done.wait [#allocation6], 512  }
  0x26   :  { %344 = vsyncadd [#allocation6], 4294966784  ;;  %vm59_vm0 = vcmask 261120   ;;  %v48_v0 = vld [vmem:[#allocation5] sm:$0xff]  ;;  %v49_v1 = vld [vmem:[#allocation5 + $0x8] sm:$0xff]  ;;  %vm208_vm1 = vcmask 1041409  }
  0x27   :  { %v50_v2 = vld [vmem:[#allocation5 + $0x10] sm:$0xff]  ;;  %v250_v3 = vpack.c.bf16 %v49_v1, %v48_v0  ;;  %v51_v4 = vld [vmem:[#allocation5 + $0x18] sm:$0xff]  ;;  %vm211_vm2 = vcmask 254976  }
  0x28   :  { %v46_v5 = vld [vmem:[#allocation2] sm:$0xff]  ;;  %v254_v6 = vpack.c.bf16 %v51_v4, %v50_v2  ;;  %v47_v7 = vld [vmem:[#allocation2 + $0x8] sm:$0xff] }
  0x29   :  { %247 = vmatprep.mubr.msk.f32.mxu0 %vm59_vm0, %v46_v5  ;;  %251 = vmatprep.subr.bf16.mxu0 %v250_v3  ;;  %v229_v8 = vld [vmem:[%s425_s2] ss:$0 sm:$0xff]  ;;  %s351_s2 = smov [#allocation7]  }
  0x2a   :  { %253 = vmatpush3.bf16.msra.mxu0 %v250_v3  ;;  %v232_v13 = vld [vmem:[%s426_s3] ss:$0 sm:$0xff]  ;;  %s219_s3 = sshll.u32 %s351_s2, 4  ;;  %s220_s3 = int_to_ptr.vmem [resolvable:$true] %s219_s3 }
  0x2b   :  { %255 = vmatprep.subr.bf16.mxu0 %v254_v6  ;;  %s319_s17 = scalar_lea.vmem %s220_s3, 32  ;;  %p324_p3 = scmp.lt.s32.totalorder %s220_s3, %s220_s3 }
  0x2c   :  { %p320_p2 = scmp.ne.s32.totalorder %s220_s3, %s319_s17  ;;  %p325_p4 = scmp.lt.s32.totalorder %s319_s17, %s319_s17 }
  0x2e   :  { %257 = vmatpush3.bf16.msra.mxu0 %v254_v6  ;;  %p326_p5 = por %p325_p4, %p324_p3 }
  0x30   :  { %p327_p6 = pnand %p326_p5, %p320_p2 }
  0x31   :  { %248 = vmatmul.mubr.msk.f32.vlgmr.msra.gmra.mrb[0].mxu0 %vm59_vm0, %v47_v7 }
 0x104   :  { %v249_v9 = vpop.f32.mrb[0].mxu0 }
 0x105   :  { %v132_v10 = vpop.f32.mrb[1].mxu0  ;;  %v138_v11 = vadd.f32 %v249_v9, %v229_v8 }
 0x106   :  { %v133_v12 = vadd.f32 %v229_v8, %v132_v10 }
 0x108   :  { %263 = vtanh.f32 %v133_v12 }
 0x109   :  { %265 = vtanh.f32 %v138_v11 }
 0x112   :  { %v264_v14 = vpop.eup %263 }
 0x113   :  { %v150_v15 = vmul.f32 %v264_v14, %v232_v13  ;;  %v266_v16 = vpop.eup %265 }
 0x114   :  { %v151_v17 = vmul.f32 %v266_v16, %v232_v13 }
 0x115   :  { %152 = vadd.xlane.f32.xlu0 %v150_v15 }
 0x119   :  { %154 = vadd.xlane.f32.xlu0 %v151_v17 }
 0x1a2   :  { %v153_v18 = vpop.xlane.xlu0 %152 }
 0x1a3   :  { %v156_v19 = vrot.slane %v153_v18, 4 }
 0x1a5   :  { %v157_v20 = vmax.f32 %v153_v18, %v156_v19 }
 0x1a6   :  { %v155_v21 = vpop.xlane.xlu0 %154 }
 0x1a7   :  { %v158_v22 = vrot.slane %v157_v20, 2  ;;  %v162_v23 = vrot.slane %v155_v21, 4 }
 0x1a9   :  { %v159_v24 = vmax.f32 %v157_v20, %v158_v22  ;;  %v163_v25 = vmax.f32 %v155_v21, %v162_v23 }
 0x1ab   :  { %v160_v26 = vrot.slane %v159_v24, 1  ;;  %v164_v27 = vrot.slane %v163_v25, 2 }
 0x1ad   :  { %v161_v28 = vmax.f32 %v159_v24, %v160_v26  ;;  %v165_v29 = vmax.f32 %v163_v25, %v164_v27 }
 0x1af   :  { %v168_v30 = vsub.f32 %v153_v18, %v161_v28  ;;  %v166_v31 = vrot.slane %v165_v29, 1 }
 0x1b1   :  { %v170_v32 = vmul.f32 1.442695, %v168_v30  ;;  %v167_v33 = vmax.f32 %v165_v29, %v166_v31 }
 0x1b3   :  { %267 = vpow2.f32 %v170_v32  ;;  %v169_v34 = vsub.f32 %v155_v21, %v167_v33 }
 0x1b5   :  { %v172_v35 = vmul.f32 1.442695, %v169_v34 }
 0x1b7   :  { %269 = vpow2.f32 %v172_v35 }
 0x1bd   :  { %v268_v36 = vpop.eup %267 }
 0x1be   :  { %v174_v37 = vrot.slane %v268_v36, 4 }
 0x1c0   :  { %v175_v38 = vadd.f32 %v268_v36, %v174_v37 }
 0x1c1   :  { %v270_v39 = vpop.eup %269 }
 0x1c2   :  { %v176_v40 = vrot.slane %v175_v38, 2  ;;  %v180_v41 = vrot.slane %v270_v39, 4 }
 0x1c4   :  { %v181_v42 = vadd.f32 %v270_v39, %v180_v41  ;;  %v177_v43 = vadd.f32 %v176_v40, %v175_v38 }
 0x1c6   :  { %v182_v44 = vrot.slane %v181_v42, 2  ;;  %v178_v45 = vrot.slane %v177_v43, 1 }
 0x1c8   :  { %v183_v46 = vadd.f32 %v182_v44, %v181_v42  ;;  %v179_v47 = vadd.f32 %v178_v45, %v177_v43 }
 0x1ca   :  { %v184_v48 = vrot.slane %v183_v46, 1  ;;  %271 = vrcp.f32 %v179_v47 }
 0x1cc   :  { %v185_v49 = vadd.f32 %v184_v48, %v183_v46 }
 0x1ce   :  { %273 = vrcp.f32 %v185_v49 }
 0x1d4   :  { %v272_v50 = vpop.eup %271 }
 0x1d5   :  { %v187_v51 = vmul.f32 %v272_v50, %v268_v36 }
 0x1d7   :  { %v190_v52 = vmul.f32 %v187_v51, %v46_v5 }
 0x1d8   :  { %v274_v53 = vpop.eup %273 }
 0x1d9   :  { %v189_v54 = vmul.f32 %v274_v53, %v270_v39  ;;  %v192_v55 = vsel %vm59_vm0, %v190_v52, 0.0 }
 0x1da   :  { %v193_v56 = vrot.slane %v192_v55, 4 }
 0x1db   :  { %v191_v57 = vmul.f32 %v189_v54, %v47_v7 }
 0x1dc   :  { %v194_v58 = vadd.f32 %v193_v56, %v192_v55 }
 0x1dd   :  { %v199_v59 = vsel %vm59_vm0, %v191_v57, 0.0 }
 0x1de   :  { %v195_v60 = vrot.slane %v194_v58, 2  ;;  %v200_v61 = vrot.slane %v199_v59, 4 }
 0x1e0   :  { %v196_v62 = vadd.f32 %v195_v60, %v194_v58  ;;  %v201_v63 = vadd.f32 %v200_v61, %v199_v59 }
 0x1e2   :  { %v202_v0 = vrot.slane %v201_v63, 2  ;;  %v197_v1 = vrot.slane %v196_v62, 1 }
 0x1e4   :  { %v203_v2 = vadd.f32 %v202_v0, %v201_v63  ;;  %v198_v4 = vadd.f32 %v197_v1, %v196_v62 }
 0x1e6   :  { %v204_v3 = vrot.slane %v203_v2, 1 }
 0x1e8   :  { %v205_v5 = vadd.f32 %v204_v3, %v203_v2 }
 0x1ea   :  { %v209_v6 = vsel %vm208_vm1, %v205_v5, %v198_v4 }
 0x1eb   :  { %212 = vst.msk [vmem:[#allocation7] sm:$0x3] %vm211_vm2, %v209_v6 }
 0x1ec   :  { %330 = shalt.err (!%p327_p6)
}
 0x1ed   :  { %s331_s20 = scalar_lea.hbm %s427_s4, 32 }
 0x1ee   :  { %p332_p7 = scmp.ne.s32.totalorder %s427_s4, %s331_s20  ;;  %p335_p8 = scmp.lt.u32.totalorder %s331_s20, %s427_s4 }
 0x1f0   :  { %p337_p9 = pnand %p335_p8, %p332_p7 }
 0x1f2   :  { %340 = shalt.err (!%p337_p9)
}
 0x1f3   :  { %222 = dma.vmem_to_hbm [thread:$0]  %s220_s3, 32, %s427_s4, [#allocation4]  }
 0x1f4   :  { %345 = dma.done.wait [#allocation4], 32  }
 0x1f5   :  { %346 = vsyncadd [#allocation4], 4294967264 }
 0x1f6   :  { %226 = vsyncpa [#allocation3], 1 }
 0x1f7   :  { %227 = vsyncpa [#allocation6], 1 }
 0x1f8   :  { %228 = vsyncpa [#allocation4], 1 }

</bundles_post_ra>
